<compile_context>
chip_gen: v5e
topology: v5e:2x2
jax: 0.10.0
libtpu: 0.0.40
codegen_flags: <defaults>
</compile_context>

<pallas_src>
import functools

import jax
import jax.numpy as jnp
from jax.experimental import pallas as pl
from jax.experimental.pallas import tpu as pltpu

BN_EPS = 1e-5
LANES = 128
MAX_TILE_ROWS = 4096  # (4096, 128) f32 block = 2 MiB; <=8.2 MiB VMEM in pass 2


def _stats_kernel(x_ref, psum_ref, psq_ref, *, tile_r, tpc, rows, need_mask):
    """Per-core partial sum(x) / sum(x^2), accumulated into the (8,128) out refs."""
    p = pl.program_id(0)
    i = pl.program_id(1)

    @pl.when(i == 0)
    def _():
        psum_ref[...] = jnp.zeros_like(psum_ref)
        psq_ref[...] = jnp.zeros_like(psq_ref)

    x = x_ref[...]                                               # (tile_r, 128)
    if need_mask:
        # Only compiled in for ragged row counts: zero rows beyond the real data.
        gstart = (p * tpc + i) * tile_r
        ridx = jax.lax.broadcasted_iota(jnp.int32, (tile_r, LANES), 0) + gstart
        x = jnp.where(ridx < rows, x, 0.0)

    if tile_r % 8 == 0:
        # pure-VALU accumulate: fold the tile into (8,128); XLU reduce deferred.
        xr = x.reshape(tile_r // 8, 8, LANES)
        psum_ref[...] += jnp.sum(xr, axis=0)
        psq_ref[...] += jnp.sum(xr * xr, axis=0)
    else:
        # small single-tile case (rows not a multiple of 8)
        psum_ref[0:1, :] += jnp.sum(x, axis=0, keepdims=True)
        psq_ref[0:1, :] += jnp.sum(x * x, axis=0, keepdims=True)


def _affine_kernel(sprm_ref, prm_ref, psum_ref, psq_ref, x_ref, o_ref):
    """out = s*x + t; s,t re-derived per block from the tiny resident partials."""
    inv_m = sprm_ref[0]                                          # 1 / M
    d = sprm_ref[1]                                              # sum(w2*beta) + b2
    sum_x = jnp.sum(psum_ref[...], keepdims=True)                # (1, 1)
    sum_sq = jnp.sum(psq_ref[...], keepdims=True)                # (1, 1)
    mean = sum_x * inv_m
    var = jnp.maximum(sum_sq * inv_m - mean * mean, 0.0)         # biased variance
    a2 = prm_ref[0:1, :]                                         # (1,128): a^2 (padded 0)
    c = prm_ref[1:2, :]                                          # (1,128): w2*gamma*a (padded 0)
    inv = jax.lax.rsqrt(a2 * var + BN_EPS)                       # (1,128), EUP
    s = jnp.sum(c * inv, keepdims=True)                          # (1,1) scalar scale
    t = d - s * mean                                             # (1,1) scalar shift
    o_ref[...] = x_ref[...] * s + t


@jax.jit
def model_forward(x1_nchw, w1, b1, gamma, beta, w2, b2):
    """x1_nchw: (N, 1, H, W) float32  ->  (N, 1, H, W) float32. (b1 cancels in BN.)"""
    N, C, H, W = x1_nchw.shape
    M = N * H * W

    # ---- lane-dense layout: (rows, 128) slab, pad-free when M % 128 == 0 ----
    x_flat = x1_nchw.reshape(-1).astype(jnp.float32)
    rows = pl.cdiv(M, LANES)
    lane_pad = rows * LANES - M
    if lane_pad:
        # fallback only for M % 128 != 0 (adds one extra copy of x)
        x_flat = jnp.pad(x_flat, (0, lane_pad))
    x2d = x_flat.reshape(rows, LANES)

    # ---- tiling: 2 MiB blocks, prefer a divisor of rows to avoid tail masking ----
    if rows <= MAX_TILE_ROWS:
        tile_r = rows                       # single full-array block (any row count)
    else:
        tile_r = next((c for c in (4096, 3072, 2048, 1536, 1024) if rows % c == 0),
                      MAX_TILE_ROWS)
    num_tiles = pl.cdiv(rows, tile_r)
    need_mask = (num_tiles * tile_r != rows)
    nsplit = 2 if (num_tiles % 2 == 0) else 1   # 2-core split of pass 1 (v7x megacore)
    tpc = num_tiles // nsplit

    # ---- tiny parameter folding (independent of x; does not serialize the passes) ----
    oc = w1.shape[0]                                           # 4
    a = jnp.sum(w1.astype(jnp.float32), axis=1)                # (4,) conv1 over dup channels
    prm = jnp.zeros((2, LANES), jnp.float32)
    prm = prm.at[0, :oc].set(a * a)                            # row 0: a^2 (zeros elsewhere)
    prm = prm.at[1, :oc].set(w2[0].astype(jnp.float32) * gamma * a)   # row 1: c
    d = jnp.sum(w2[0] * beta) + b2[0]
    sprm = jnp.stack([jnp.asarray(1.0 / M, jnp.float32), d.astype(jnp.float32)])

    # ---- pass 1: streaming partial sum / sum-of-squares (per-core (8,128) rows) ----
    psum, psq = pl.pallas_call(
        functools.partial(_stats_kernel, tile_r=tile_r, tpc=tpc, rows=rows,
                          need_mask=need_mask),
        out_shape=(jax.ShapeDtypeStruct((nsplit * 8, LANES), jnp.float32),
                   jax.ShapeDtypeStruct((nsplit * 8, LANES), jnp.float32)),
        grid_spec=pltpu.PrefetchScalarGridSpec(
            num_scalar_prefetch=0,
            grid=(nsplit, tpc),
            in_specs=[pl.BlockSpec((tile_r, LANES),
                                   lambda p, i: (p * tpc + i, 0))],
            out_specs=(pl.BlockSpec((8, LANES), lambda p, i: (p, 0)),
                       pl.BlockSpec((8, LANES), lambda p, i: (p, 0)))),
        compiler_params=pltpu.CompilerParams(
            dimension_semantics=("parallel", "arbitrary"),
            vmem_limit_bytes=32 * 1024 * 1024),
    )(x2d)

    # ---- pass 2: streaming affine; s,t derived in-kernel from the tiny partials ----
    out2d = pl.pallas_call(
        _affine_kernel,
        out_shape=jax.ShapeDtypeStruct((rows, LANES), jnp.float32),
        grid_spec=pltpu.PrefetchScalarGridSpec(
            num_scalar_prefetch=0,
            grid=(num_tiles,),
            in_specs=[pl.BlockSpec(memory_space=pltpu.MemorySpace.SMEM),     # sprm (2,)
                      pl.BlockSpec((2, LANES), lambda i: (0, 0)),            # prm
                      pl.BlockSpec((nsplit * 8, LANES), lambda i: (0, 0)),   # psum
                      pl.BlockSpec((nsplit * 8, LANES), lambda i: (0, 0)),   # psq
                      pl.BlockSpec((tile_r, LANES), lambda i: (i, 0))],      # x
            out_specs=pl.BlockSpec((tile_r, LANES), lambda i: (i, 0))),
        compiler_params=pltpu.CompilerParams(
            dimension_semantics=("parallel",),
            vmem_limit_bytes=32 * 1024 * 1024),
    )(sprm, prm, psum, psq, x2d)

    out_flat = out2d.reshape(-1)
    if lane_pad:
        out_flat = out_flat[:M]
    return out_flat.reshape(N, 1, H, W)


if __name__ == "__main__":
    key = jax.random.PRNGKey(0)
    k_x, k_w1, k_b1, k_w2, k_b2 = jax.random.split(key, 5)

    # Small shapes consistent with the forward: batch=2, 1 channel, 16x16 spatial
    N, C, H, W = 2, 1, 16, 16
    x1 = jax.random.normal(k_x, (N, C, H, W), dtype=jnp.float32)

    # Deterministic "PyTorch-like" parameter init (uniform +-1/sqrt(fan_in))
    fan1 = 4.0  # conv1: in_channels=4, 1x1 kernel
    w1 = jax.random.uniform(k_w1, (4, 4), jnp.float32,
                            -1.0 / jnp.sqrt(fan1), 1.0 / jnp.sqrt(fan1))
    b1 = jax.random.uniform(k_b1, (4,), jnp.float32,
                            -1.0 / jnp.sqrt(fan1), 1.0 / jnp.sqrt(fan1))
    fan2 = 4.0  # conv2: in_channels=4, 1x1 kernel
    w2 = jax.random.uniform(k_w2, (1, 4), jnp.float32,
                            -1.0 / jnp.sqrt(fan2), 1.0 / jnp.sqrt(fan2))
    b2 = jax.random.uniform(k_b2, (1,), jnp.float32,
                            -1.0 / jnp.sqrt(fan2), 1.0 / jnp.sqrt(fan2))

    # BatchNorm2d default affine params
    gamma = jnp.ones((4,), jnp.float32)
    beta = jnp.zeros((4,), jnp.float32)

    out = model_forward(x1, w1, b1, gamma, beta, w2, b2)
    jax.block_until_ready(out)

    # Pure-JAX reference following the original torch semantics
    x2_ref = jnp.concatenate([x1] * 4, axis=1)                     # (N, 4, H, W)
    h_ref = jnp.einsum('nchw,oc->nohw', x2_ref, w1) + b1[None, :, None, None]
    mean_ref = jnp.mean(h_ref, axis=(0, 2, 3), keepdims=True)
    var_ref = jnp.mean((h_ref - mean_ref) ** 2, axis=(0, 2, 3), keepdims=True)
    hbn_ref = (h_ref - mean_ref) / jnp.sqrt(var_ref + BN_EPS)
    hbn_ref = hbn_ref * gamma[None, :, None, None] + beta[None, :, None, None]
    out_ref = jnp.einsum('nchw,oc->nohw', hbn_ref, w2) + b2[None, :, None, None]

    assert out.shape == (N, 1, H, W), out.shape
    assert jnp.allclose(out, out_ref, atol=1e-4, rtol=1e-4), \
        float(jnp.max(jnp.abs(out - out_ref)))

    print("KERNEL_OK")
</pallas_src>

<mosaic_0001>
module attributes {stable_mosaic.version = 11 : i64} {
  func.func @_affine_kernel(%arg0: i32, %arg1: memref<2xf32, #tpu.memory_space<smem>>, %arg2: memref<2x128xf32, #tpu.memory_space<vmem>>, %arg3: memref<8x128xf32, #tpu.memory_space<vmem>>, %arg4: memref<8x128xf32, #tpu.memory_space<vmem>>, %arg5: memref<4x128xf32, #tpu.memory_space<vmem>>, %arg6: memref<4x128xf32, #tpu.memory_space<vmem>>) attributes {dimension_semantics = [#tpu.dimension_semantics<parallel>], iteration_bounds = array<i64: 1>, scalar_prefetch = 0 : i64, scratch_operands = 0 : i64, tpu.core_type = #tpu.core_type<tc>, window_params = [{transform_indices = @transform_0, window_bounds = array<i64: 2>}, {pipeline_mode = #tpu.pipeline_mode<synchronous>, transform_indices = @transform_1, window_bounds = array<i64: 2, 128>}, {pipeline_mode = #tpu.pipeline_mode<synchronous>, transform_indices = @transform_2, window_bounds = array<i64: 8, 128>}, {pipeline_mode = #tpu.pipeline_mode<synchronous>, transform_indices = @transform_3, window_bounds = array<i64: 8, 128>}, {transform_indices = @transform_4, window_bounds = array<i64: 4, 128>}, {transform_indices = @transform_5, window_bounds = array<i64: 4, 128>}]} {
    %c0 = arith.constant 0 : index
    %0 = memref.load %arg1[%c0] : memref<2xf32, #tpu.memory_space<smem>>
    %c1 = arith.constant 1 : index
    %1 = memref.load %arg1[%c1] : memref<2xf32, #tpu.memory_space<smem>>
    %c0_0 = arith.constant 0 : index
    %c0_1 = arith.constant 0 : index
    %2 = vector.load %arg3[%c0_0, %c0_1] : memref<8x128xf32, #tpu.memory_space<vmem>>, vector<8x128xf32>
    %3 = vector.shape_cast %2 : vector<8x128xf32> to vector<1x8x128xf32>
    %cst = arith.constant dense<0.000000e+00> : vector<1xf32>
    %4 = vector.multi_reduction <add>, %3, %cst [1, 2] : vector<1x8x128xf32> to vector<1xf32>
    %5 = vector.shape_cast %4 : vector<1xf32> to vector<1x1x1xf32>
    %6 = vector.extract %5[0, 0, 0] : f32 from vector<1x1x1xf32>
    %7 = vector.broadcast %6 : f32 to vector<1x1xf32>
    %c0_2 = arith.constant 0 : index
    %c0_3 = arith.constant 0 : index
    %8 = vector.load %arg4[%c0_2, %c0_3] : memref<8x128xf32, #tpu.memory_space<vmem>>, vector<8x128xf32>
    %9 = vector.shape_cast %8 : vector<8x128xf32> to vector<1x8x128xf32>
    %cst_4 = arith.constant dense<0.000000e+00> : vector<1xf32>
    %10 = vector.multi_reduction <add>, %9, %cst_4 [1, 2] : vector<1x8x128xf32> to vector<1xf32>
    %11 = vector.shape_cast %10 : vector<1xf32> to vector<1x1x1xf32>
    %12 = vector.extract %11[0, 0, 0] : f32 from vector<1x1x1xf32>
    %13 = vector.broadcast %12 : f32 to vector<1x1xf32>
    %14 = vector.broadcast %0 : f32 to vector<1x1xf32>
    %15 = arith.mulf %7, %14 : vector<1x1xf32>
    %16 = vector.broadcast %0 : f32 to vector<1x1xf32>
    %17 = arith.mulf %13, %16 : vector<1x1xf32>
    %18 = arith.mulf %15, %15 : vector<1x1xf32>
    %19 = arith.subf %17, %18 : vector<1x1xf32>
    %cst_5 = arith.constant 0.000000e+00 : f32
    %20 = vector.broadcast %cst_5 : f32 to vector<1x1xf32>
    %21 = arith.maximumf %19, %20 : vector<1x1xf32>
    %c0_6 = arith.constant 0 : index
    %c0_7 = arith.constant 0 : index
    %22 = vector.load %arg2[%c0_6, %c0_7] : memref<2x128xf32, #tpu.memory_space<vmem>>, vector<1x128xf32>
    %c1_8 = arith.constant 1 : index
    %c0_9 = arith.constant 0 : index
    %23 = vector.load %arg2[%c1_8, %c0_9] : memref<2x128xf32, #tpu.memory_space<vmem>>, vector<1x128xf32>
    %24 = vector.broadcast %21 : vector<1x1xf32> to vector<1x128xf32>
    %25 = arith.mulf %22, %24 : vector<1x128xf32>
    %cst_10 = arith.constant 9.99999974E-6 : f32
    %26 = vector.broadcast %cst_10 : f32 to vector<1x128xf32>
    %27 = arith.addf %25, %26 : vector<1x128xf32>
    %28 = math.rsqrt %27 : vector<1x128xf32>
    %29 = arith.mulf %23, %28 : vector<1x128xf32>
    %30 = vector.shape_cast %29 : vector<1x128xf32> to vector<1x1x128xf32>
    %cst_11 = arith.constant dense<0.000000e+00> : vector<1xf32>
    %31 = vector.multi_reduction <add>, %30, %cst_11 [1, 2] : vector<1x1x128xf32> to vector<1xf32>
    %32 = vector.shape_cast %31 : vector<1xf32> to vector<1x1x1xf32>
    %33 = vector.extract %32[0, 0, 0] : f32 from vector<1x1x1xf32>
    %34 = vector.broadcast %33 : f32 to vector<1x1xf32>
    %35 = arith.mulf %34, %15 : vector<1x1xf32>
    %36 = vector.broadcast %1 : f32 to vector<1x1xf32>
    %37 = arith.subf %36, %35 : vector<1x1xf32>
    %c0_12 = arith.constant 0 : index
    %c0_13 = arith.constant 0 : index
    %38 = vector.load %arg5[%c0_12, %c0_13] : memref<4x128xf32, #tpu.memory_space<vmem>>, vector<4x128xf32>
    %39 = vector.broadcast %34 : vector<1x1xf32> to vector<4x128xf32>
    %40 = arith.mulf %38, %39 : vector<4x128xf32>
    %41 = vector.broadcast %37 : vector<1x1xf32> to vector<4x128xf32>
    %42 = arith.addf %40, %41 : vector<4x128xf32>
    %c0_14 = arith.constant 0 : index
    %c0_15 = arith.constant 0 : index
    %43 = vector.load %arg6[%c0_14, %c0_15] : memref<4x128xf32, #tpu.memory_space<vmem>>, vector<4x128xf32>
    tpu.vector_store %arg6[%c0_14, %c0_15], %42 {strides = array<i32>} : memref<4x128xf32, #tpu.memory_space<vmem>>, vector<4x128xf32>,
    return
  }
  func.func @transform_0(%arg0: i32) -> i32 {
    %c0_i32 = arith.constant 0 : i32
    %c0_i32_0 = arith.constant 0 : i32
    return %c0_i32 : i32
  }
  func.func @transform_1(%arg0: i32) -> (i32, i32) {
    %c0_i32 = arith.constant 0 : i32
    %c0_i32_0 = arith.constant 0 : i32
    %c0_i32_1 = arith.constant 0 : i32
    return %c0_i32, %c0_i32_0 : i32, i32
  }
  func.func @transform_2(%arg0: i32) -> (i32, i32) {
    %c0_i32 = arith.constant 0 : i32
    %c0_i32_0 = arith.constant 0 : i32
    %c0_i32_1 = arith.constant 0 : i32
    return %c0_i32, %c0_i32_0 : i32, i32
  }
  func.func @transform_3(%arg0: i32) -> (i32, i32) {
    %c0_i32 = arith.constant 0 : i32
    %c0_i32_0 = arith.constant 0 : i32
    %c0_i32_1 = arith.constant 0 : i32
    return %c0_i32, %c0_i32_0 : i32, i32
  }
  func.func @transform_4(%arg0: i32) -> (i32, i32) {
    %c0_i32 = arith.constant 0 : i32
    %c0_i32_0 = arith.constant 0 : i32
    return %arg0, %c0_i32 : i32, i32
  }
  func.func @transform_5(%arg0: i32) -> (i32, i32) {
    %c0_i32 = arith.constant 0 : i32
    %c0_i32_0 = arith.constant 0 : i32
    return %arg0, %c0_i32 : i32, i32
  }
}

module attributes {stable_mosaic.version = 11 : i64} {
  func.func @_stats_kernel(%arg0: i32, %arg1: i32, %arg2: memref<4x128xf32, #tpu.memory_space<vmem>>, %arg3: memref<8x128xf32, #tpu.memory_space<vmem>>, %arg4: memref<8x128xf32, #tpu.memory_space<vmem>>) attributes {dimension_semantics = [#tpu.dimension_semantics<parallel>, #tpu.dimension_semantics<arbitrary>], iteration_bounds = array<i64: 1, 1>, scalar_prefetch = 0 : i64, scratch_operands = 0 : i64, tpu.core_type = #tpu.core_type<tc>, window_params = [{transform_indices = @transform_0, window_bounds = array<i64: 4, 128>}, {transform_indices = @transform_1, window_bounds = array<i64: 8, 128>}, {transform_indices = @transform_2, window_bounds = array<i64: 8, 128>}]} {
    %c0_i32 = arith.constant 0 : i32
    %0 = arith.cmpi eq, %arg1, %c0_i32 : i32
    %1 = arith.extui %0 : i1 to i32
    %c0_i32_0 = arith.constant 0 : i32
    %2 = arith.cmpi ne, %1, %c0_i32_0 : i32
    scf.if %2 {
      %cst_11 = arith.constant 0.000000e+00 : f32
      %15 = vector.broadcast %cst_11 : f32 to vector<8x128xf32>
      %c0_12 = arith.constant 0 : index
      %c0_13 = arith.constant 0 : index
      %16 = vector.load %arg3[%c0_12, %c0_13] : memref<8x128xf32, #tpu.memory_space<vmem>>, vector<8x128xf32>
      tpu.vector_store %arg3[%c0_12, %c0_13], %15 {strides = array<i32>} : memref<8x128xf32, #tpu.memory_space<vmem>>, vector<8x128xf32>,
      %cst_14 = arith.constant 0.000000e+00 : f32
      %17 = vector.broadcast %cst_14 : f32 to vector<8x128xf32>
      %c0_15 = arith.constant 0 : index
      %c0_16 = arith.constant 0 : index
      %18 = vector.load %arg4[%c0_15, %c0_16] : memref<8x128xf32, #tpu.memory_space<vmem>>, vector<8x128xf32>
      tpu.vector_store %arg4[%c0_15, %c0_16], %17 {strides = array<i32>} : memref<8x128xf32, #tpu.memory_space<vmem>>, vector<8x128xf32>,
    } else {
    }
    %c0 = arith.constant 0 : index
    %c0_1 = arith.constant 0 : index
    %3 = vector.load %arg2[%c0, %c0_1] : memref<4x128xf32, #tpu.memory_space<vmem>>, vector<4x128xf32>
    %c0_2 = arith.constant 0 : index
    %c0_3 = arith.constant 0 : index
    %4 = vector.load %arg3[%c0_2, %c0_3] : memref<8x128xf32, #tpu.memory_space<vmem>>, vector<1x128xf32>
    %cst = arith.constant dense<0.000000e+00> : vector<128xf32>
    %5 = vector.multi_reduction <add>, %3, %cst [0] : vector<4x128xf32> to vector<128xf32>
    %6 = vector.shape_cast %5 : vector<128xf32> to vector<1x128xf32>
    %7 = arith.addf %4, %6 : vector<1x128xf32>
    %c0_4 = arith.constant 0 : index
    %c0_5 = arith.constant 0 : index
    %8 = vector.load %arg3[%c0_4, %c0_5] : memref<8x128xf32, #tpu.memory_space<vmem>>, vector<1x128xf32>
    tpu.vector_store %arg3[%c0_4, %c0_5], %7 {strides = array<i32>} : memref<8x128xf32, #tpu.memory_space<vmem>>, vector<1x128xf32>,
    %c0_6 = arith.constant 0 : index
    %c0_7 = arith.constant 0 : index
    %9 = vector.load %arg4[%c0_6, %c0_7] : memref<8x128xf32, #tpu.memory_space<vmem>>, vector<1x128xf32>
    %10 = arith.mulf %3, %3 : vector<4x128xf32>
    %cst_8 = arith.constant dense<0.000000e+00> : vector<128xf32>
    %11 = vector.multi_reduction <add>, %10, %cst_8 [0] : vector<4x128xf32> to vector<128xf32>
    %12 = vector.shape_cast %11 : vector<128xf32> to vector<1x128xf32>
    %13 = arith.addf %9, %12 : vector<1x128xf32>
    %c0_9 = arith.constant 0 : index
    %c0_10 = arith.constant 0 : index
    %14 = vector.load %arg4[%c0_9, %c0_10] : memref<8x128xf32, #tpu.memory_space<vmem>>, vector<1x128xf32>
    tpu.vector_store %arg4[%c0_9, %c0_10], %13 {strides = array<i32>} : memref<8x128xf32, #tpu.memory_space<vmem>>, vector<1x128xf32>,
    return
  }
  func.func @transform_0(%arg0: i32, %arg1: i32) -> (i32, i32) {
    %c1_i32 = arith.constant 1 : i32
    %0 = arith.muli %arg0, %c1_i32 : i32
    %1 = arith.addi %0, %arg1 : i32
    %c0_i32 = arith.constant 0 : i32
    %c0_i32_0 = arith.constant 0 : i32
    return %1, %c0_i32 : i32, i32
  }
  func.func @transform_1(%arg0: i32, %arg1: i32) -> (i32, i32) {
    %c0_i32 = arith.constant 0 : i32
    %c0_i32_0 = arith.constant 0 : i32
    return %arg0, %c0_i32 : i32, i32
  }
  func.func @transform_2(%arg0: i32, %arg1: i32) -> (i32, i32) {
    %c0_i32 = arith.constant 0 : i32
    %c0_i32_0 = arith.constant 0 : i32
    return %arg0, %c0_i32 : i32, i32
  }
}

</mosaic_0001>

<bundles_post_ra>
// kernel: model_forward.2
= control target key start
LH: loop header
LB: loop body
LE: loop exit
PB: predicated region body
PF: predicated region fallthrough
CT: control target
= control target key end

     0   :  { %vm35_vm0 = vcmask 1043456   ;;  %v71_v0 = vmov 0.0   ;;  %s108_s1 = inlined_call_operand.vmem [shape: f32[8,128], index: 1, kind: output, shape index: {0}]   ;;  %s109_s2 = inlined_call_operand.vmem [shape: f32[8,128], index: 2, kind: output, shape index: {1}]   ;;  %s110_s0 = inlined_call_operand.vmem [shape: f32[4,128], index: 0, kind: input, shape index: {}]  }
   0x1   :  { %31 = vst [vmem:[%s108_s1] sm:$0xff] %v71_v0  ;;  %v33_v1 = vld [vmem:[%s110_s0] sm:$0xf] }
   0x2   :  { %32 = vst [vmem:[%s109_s2] sm:$0xff] %v71_v0  ;;  %v36_v2 = vsel %vm35_vm0, %v33_v1, 0.0  ;;  %v46_v3 = vmul.f32 %v33_v1, %v33_v1 }
   0x3   :  { %v37_v4 = vrot.slane %v36_v2, 4 }
   0x4   :  { %v47_v5 = vsel %vm35_vm0, %v46_v3, 0.0 }
   0x5   :  { %v38_v6 = vadd.f32 %v37_v4, %v36_v2  ;;  %v48_v7 = vrot.slane %v47_v5, 4 }
   0x7   :  { %v39_v8 = vrot.slane %v38_v6, 2  ;;  %v49_v9 = vadd.f32 %v48_v7, %v47_v5 }
   0x8   :  { %v34_v14 = vld [vmem:[%s108_s1] sm:$0x1] }
   0x9   :  { %v40_v10 = vadd.f32 %v39_v8, %v38_v6  ;;  %v50_v11 = vrot.slane %v49_v9, 2  ;;  %v45_v17 = vld [vmem:[%s109_s2] sm:$0x1] }
   0xb   :  { %v41_v12 = vrot.slane %v40_v10, 1  ;;  %v51_v13 = vadd.f32 %v50_v11, %v49_v9 }
   0xd   :  { %v42_v15 = vadd.f32 %v41_v12, %v40_v10  ;;  %v52_v16 = vrot.slane %v51_v13, 1 }
   0xf   :  { %v43_v18 = vadd.f32 %v42_v15, %v34_v14  ;;  %v53_v19 = vadd.f32 %v52_v16, %v51_v13 }
  0x11   :  { %44 = vst [vmem:[%s108_s1] sm:$0x1] %v43_v18  ;;  %v54_v20 = vadd.f32 %v53_v19, %v45_v17 }
  0x13   :  { %55 = vst [vmem:[%s109_s2] sm:$0x1] %v54_v20 }

// kernel: model_forward.3
= control target key start
LH: loop header
LB: loop body
LE: loop exit
PB: predicated region body
PF: predicated region fallthrough
CT: control target
= control target key end

     0   :  { %10 = vsyncpa [#allocation3], 0  ;;  %s126_s21 = smov [#allocation2]   ;;  %s178_s0 = inlined_call_operand.vmem [shape: f32[2], index: 0, kind: input, shape index: {}]   ;;  %s179_s1 = inlined_call_operand.vmem [shape: f32[2,128], index: 1, kind: input, shape index: {}]   ;;  %s180_s2 = inlined_call_operand.vmem [shape: f32[8,128], index: 2, kind: input, shape index: {}]   ;;  %s181_s3 = inlined_call_operand.vmem [shape: f32[8,128], index: 3, kind: input, shape index: {}]   ;;  %s182_s4 = inlined_call_operand.vmem [shape: f32[4,128], index: 4, kind: input, shape index: {}]   ;;  %s183_s5 = inlined_call_operand.vmem [shape: f32[4,128], index: 5, kind: output, shape index: {}]  }
   0x1   :  { %s16_s20 = sshll.u32 %s178_s0, 4  ;;  %s17_s20 = int_to_ptr.vmem [resolvable:$true] %s16_s20 }
   0x2   :  { %19 = dma.vmem_to_smem %s17_s20, 16, %s126_s21, [#allocation3]  }
   0x3   :  { %124 = dma.done.wait [#allocation3], 16  }
   0x4   :  { %125 = vsyncadd [#allocation3], 4294967280 }
   0x5   :  { %32 = sfence }
   0x6   :  { %v35_v0 = vld [vmem:[%s180_s2] sm:$0xff]  ;;  %s33_s0 = sld [smem:[#allocation2]]  ;;  %vm78_vm3 = vcmask 1040384  }
   0x7   :  { %36 = vadd.xlane.f32.xlu0 %v35_v0  ;;  %v46_v1 = vld [vmem:[%s181_s3] sm:$0xff]  ;;  %s102_s30 = sld [smem:[#allocation2 + $0x1]] }
   0x8   :  { %v63_v23 = vld [vmem:[%s179_s1] sm:$0x1]  ;;  %v64_v32 = vld [vmem:[%s179_s1 + $0x1] sm:$0x1] }
   0x9   :  { %v93_v46 = vld [vmem:[%s182_s4] sm:$0xf] }
   0xc   :  { %v57_v17 = vstv %s33_s0 }
   0xd   :  { %v91_v45 = vstv %s102_s30 }
   0xf   :  { %47 = vadd.xlane.f32.xlu0 %v46_v1 }
  0x7a   :  { %v37_v2 = vpop.xlane.xlu0 %36 }
  0x7b   :  { %v38_v3 = vrot.slane %v37_v2, 4 }
  0x7d   :  { %v39_v4 = vadd.f32 %v38_v3, %v37_v2 }
  0x7f   :  { %v40_v5 = vrot.slane %v39_v4, 2 }
  0x81   :  { %v41_v6 = vadd.f32 %v40_v5, %v39_v4 }
  0x82   :  { %v48_v7 = vpop.xlane.xlu0 %47 }
  0x83   :  { %v49_v8 = vrot.slane %v48_v7, 4  ;;  %v42_v9 = vrot.slane %v41_v6, 1 }
  0x85   :  { %v50_v10 = vadd.f32 %v49_v8, %v48_v7  ;;  %v43_v11 = vadd.f32 %v42_v9, %v41_v6 }
  0x87   :  { %v51_v12 = vrot.slane %v50_v10, 2  ;;  %103 = vpush %v43_v11 }
  0x89   :  { %v52_v13 = vadd.f32 %v51_v12, %v50_v10 }
  0x8b   :  { %v53_v14 = vrot.slane %v52_v13, 1 }
  0x8d   :  { %v54_v15 = vadd.f32 %v53_v14, %v52_v13 }
  0x8f   :  { %105 = vpush %v54_v15 }
  0xb8   :  { %s104_s2 = spop %103 }
  0xb9   :  { %v45_v16 = vstv %s104_s2 }
  0xba   :  { %v58_v18 = vmul.f32 %v57_v17, %v45_v16 }
  0xbc   :  { %v60_v20 = vmul.f32 %v58_v18, %v58_v18 }
  0xc0   :  { %s106_s3 = spop %105 }
  0xc1   :  { %v56_v19 = vstv %s106_s3 }
  0xc2   :  { %v59_v21 = vmul.f32 %v57_v17, %v56_v19 }
  0xc4   :  { %v61_v22 = vsub.f32 %v59_v21, %v60_v20 }
  0xc6   :  { %v62_v24 = vmax.f32 %v61_v22, 0.0 }
  0xc8   :  { %v65_v25 = vmul.f32 %v63_v23, %v62_v24 }
  0xca   :  { %v66_v26 = vadd.f32 1e-05, %v65_v25 }
  0xcc   :  { %110 = vrsqrt.f32 %v66_v26  ;;  %vm73_vm1 = vweird.f32 %v66_v26 }
  0xd2   :  { %v111_v27 = vpop.eup %110 }
  0xd3   :  { %v68_v28 = vmul.f32 %v111_v27, %v66_v26  ;;  %vm74_vm0 = vweird.f32 %v111_v27 }
  0xd4   :  { %vm75_vm2 = vmor %vm73_vm1, %vm74_vm0 }
  0xd5   :  { %v69_v29 = vmul.f32 %v111_v27, %v68_v28 }
  0xd7   :  { %v70_v30 = vmul.f32 0.5, %v69_v29 }
  0xd9   :  { %v71_v31 = vsub.f32 1.5, %v70_v30 }
  0xdb   :  { %v72_v33 = vmul.f32 %v111_v27, %v71_v31 }
  0xdd   :  { %v76_v34 = vsel %vm75_vm2, %v111_v27, %v72_v33 }
  0xde   :  { %v77_v35 = vmul.f32 %v76_v34, %v64_v32 }
  0xe0   :  { %v79_v36 = vsel %vm78_vm3, %v77_v35, 0.0 }
  0xe1   :  { %80 = vadd.xlane.f32.xlu1 %v79_v36 }
 0x154   :  { %v81_v37 = vpop.xlane.xlu1 %80 }
 0x155   :  { %v82_v38 = vrot.slane %v81_v37, 4 }
 0x157   :  { %v83_v39 = vadd.f32 %v82_v38, %v81_v37 }
 0x159   :  { %v84_v40 = vrot.slane %v83_v39, 2 }
 0x15b   :  { %v85_v41 = vadd.f32 %v84_v40, %v83_v39 }
 0x15d   :  { %v86_v42 = vrot.slane %v85_v41, 1 }
 0x15f   :  { %v87_v43 = vadd.f32 %v86_v42, %v85_v41 }
 0x161   :  { %107 = vpush %v87_v43 }
 0x192   :  { %s108_s6 = spop %107 }
 0x193   :  { %v89_v44 = vstv %s108_s6 }
 0x194   :  { %v90_v47 = vmul.f32 %v89_v44, %v58_v18  ;;  %v94_v49 = vmul.f32 %v93_v46, %v89_v44 }
 0x196   :  { %v92_v48 = vsub.f32 %v91_v45, %v90_v47 }
 0x198   :  { %v95_v50 = vadd.f32 %v94_v49, %v92_v48 }
 0x19a   :  { %96 = vst [vmem:[%s183_s5] sm:$0xf] %v95_v50 }
 0x19b   :  { %101 = vsyncpa [#allocation3], 1 }

</bundles_post_ra>
